<compile_context>
chip_gen: v6e
topology: v6e:2x2x1
jax: 0.10.0
libtpu: 0.0.40
codegen_flags: <defaults>
</compile_context>

<pallas_src>
import functools

import jax
import jax.numpy as jnp
from jax.experimental import pallas as pl
from jax.experimental.pallas import tpu as pltpu


def _round_up(a: int, b: int) -> int:
    return ((a + b - 1) // b) * b


def _vmem_capacity_bytes() -> int:
    """Physical per-core VMEM; conservative (v7x-safe) fallback if query fails."""
    try:
        info = pltpu.get_tpu_info()
        cap = int(getattr(info, "vmem_capacity_bytes", 0) or 0)
        if cap > 0:
            return cap
    except Exception:
        pass
    return 64 << 20  # v7x per-TensorCore VMEM (smallest across generations)


def _conv1d_kernel(x_ref, w_ref, b_ref, o_ref):
    # x_ref: [bm, nx] (compute dtype)   w_ref: [nx, bn] (compute dtype)
    # b_ref: [1, bn]  (f32)             o_ref: [bm, bn] (output dtype)
    acc = jnp.dot(x_ref[...], w_ref[...], preferred_element_type=jnp.float32)
    o_ref[...] = (acc + b_ref[...]).astype(o_ref.dtype)


@functools.partial(jax.jit, static_argnames=("block_m", "block_n", "compute_dtype"))
def conv1d_pallas(x, w, b, *, block_m=512, block_n=512, compute_dtype=jnp.bfloat16):
    """Conv1D forward: x[..., nx] @ w[nx, nf] + b[nf] -> [..., nf]."""
    orig_shape = x.shape
    nx = orig_shape[-1]
    nf = w.shape[-1]
    out_dtype = x.dtype
    cdt = jnp.dtype(compute_dtype)

    # Cast once in the wrapper: halves x HBM traffic / VMEM for bf16 and removes
    # the per-(i, j) in-kernel convert of the same row block.
    x2d = x.reshape(-1, nx).astype(cdt)
    M = x2d.shape[0]

    # Row tile: multiple of 16 sublanes (valid for both 16-bit and 32-bit tiles),
    # capped by the requested block_m and the (rounded-up) row count.
    bm = min(_round_up(max(block_m, 16), 16), _round_up(M, 16))
    # Output-feature tile: lane-dense multiple of 128, capped near nf so weight
    # columns are streamed rather than held as one giant resident tile.
    bn = min(_round_up(max(block_n, 128), 128), _round_up(nf, 128))

    w_c = w.astype(cdt)                         # bf16 weights: half resident VMEM
    b2 = b.reshape(1, nf).astype(jnp.float32)   # bias added in f32

    # Generation-aware VMEM budget (v5e/v6e: 128 MiB, v7x: 64 MiB per TC).
    budget = int(0.75 * _vmem_capacity_bytes())
    o_bytes = jnp.dtype(out_dtype).itemsize

    def footprint(bm_, bn_):
        tile = (bm_ * nx * cdt.itemsize          # x row tile
                + nx * bn_ * cdt.itemsize        # weight column tile
                + bn_ * 4                        # f32 bias tile
                + bm_ * bn_ * o_bytes)           # output tile
        return 2 * tile + bm_ * bn_ * 4          # double-buffered + f32 acc headroom

    # Shrink tiles until the double-buffered footprint fits the budget.
    while footprint(bm, bn) > budget and bm >= 32:
        bm = _round_up(bm // 2, 16)
    while footprint(bm, bn) > budget and bn >= 256:
        bn = _round_up(bn // 2, 128)

    need = footprint(bm, bn)
    # Never below compiler default / actual need; capped at ~75% of physical VMEM.
    vmem_limit = int(max(min(budget, max(32 << 20, need + (8 << 20))), need))

    # Ragged tails on both axes are handled by Pallas block masking (no padding).
    grid = (pl.cdiv(M, bm), pl.cdiv(nf, bn))

    out2d = pl.pallas_call(
        _conv1d_kernel,
        out_shape=jax.ShapeDtypeStruct((M, nf), out_dtype),
        grid_spec=pltpu.PrefetchScalarGridSpec(
            num_scalar_prefetch=0,
            grid=grid,
            in_specs=[
                pl.BlockSpec((bm, nx), lambda i, j: (i, 0)),   # x row tile (reused across j)
                pl.BlockSpec((nx, bn), lambda i, j: (0, j)),   # weight column tile (streamed)
                pl.BlockSpec((1, bn), lambda i, j: (0, j)),    # f32 bias tile
            ],
            out_specs=pl.BlockSpec((bm, bn), lambda i, j: (i, j)),
        ),
        compiler_params=pltpu.CompilerParams(
            dimension_semantics=("parallel", "parallel"),
            vmem_limit_bytes=vmem_limit,
        ),
    )(x2d, w_c, b2)

    return out2d.reshape(orig_shape[:-1] + (nf,))


def conv1d_reference_f32(x, w, b):
    nx = x.shape[-1]
    out = jnp.dot(x.reshape(-1, nx), w) + b
    return out.reshape(x.shape[:-1] + (w.shape[-1],))


def conv1d_reference_bf16(x, w, b):
    # Matched-precision reference for the default bf16 MXU path (f32 accumulation).
    nx = x.shape[-1]
    out = jnp.dot(
        x.reshape(-1, nx).astype(jnp.bfloat16),
        w.astype(jnp.bfloat16),
        preferred_element_type=jnp.float32,
    ) + b
    return out.astype(x.dtype).reshape(x.shape[:-1] + (w.shape[-1],))


if __name__ == "__main__":
    # Shapes consistent with the module: x is [batch, seq, nx]; Conv1D(nf, nx).
    batch, seq = 2, 8
    nx, nf = 128, 256

    key = jax.random.PRNGKey(0)
    kx, kw, kb, kt, kw2, kb2 = jax.random.split(key, 6)

    x = jax.random.normal(kx, (batch, seq, nx), dtype=jnp.float32)
    # Conv1D-style weight ~ N(0, 0.02^2); non-zero bias to exercise the bias path.
    w = 0.02 * jax.random.normal(kw, (nx, nf), dtype=jnp.float32)
    b = 0.1 * jax.random.normal(kb, (nf,), dtype=jnp.float32)

    # 1) Full-precision path: tight check against the f32 reference.
    out_f32 = jax.block_until_ready(conv1d_pallas(x, w, b, compute_dtype=jnp.float32))
    ref_f32 = conv1d_reference_f32(x, w, b)
    assert out_f32.shape == (batch, seq, nf)
    assert jnp.allclose(out_f32, ref_f32, atol=1e-4, rtol=1e-4), "f32 path mismatch"

    # 2) Default bf16-MXU path: tight check vs. a matched-precision reference,
    #    loose check vs. the pure-f32 reference.
    out_bf16 = jax.block_until_ready(conv1d_pallas(x, w, b))
    ref_bf16 = conv1d_reference_bf16(x, w, b)
    assert jnp.allclose(out_bf16, ref_bf16, atol=1e-3, rtol=1e-3), "bf16 path mismatch"
    assert jnp.allclose(out_bf16, ref_f32, atol=5e-2, rtol=5e-2), "bf16 path far from f32 ref"

    # 3) Ragged M: 15 rows (not a multiple of the 16-sublane row tile); no padding copies.
    x_tail = jax.random.normal(kt, (3, 5, nx), dtype=jnp.float32)
    out_tail = jax.block_until_ready(
        conv1d_pallas(x_tail, w, b, compute_dtype=jnp.float32)
    )
    ref_tail = conv1d_reference_f32(x_tail, w, b)
    assert out_tail.shape == (3, 5, nf)
    assert jnp.allclose(out_tail, ref_tail, atol=1e-4, rtol=1e-4), "ragged-M mismatch"

    # 4) Ragged nf: 320 output features (not a multiple of 128) — masked lane tail,
    #    no full-width weight fallback and no weight padding copies.
    nf2 = 320
    w2 = 0.02 * jax.random.normal(kw2, (nx, nf2), dtype=jnp.float32)
    b2 = 0.1 * jax.random.normal(kb2, (nf2,), dtype=jnp.float32)
    out_n = jax.block_until_ready(conv1d_pallas(x, w2, b2, compute_dtype=jnp.float32))
    ref_n = conv1d_reference_f32(x, w2, b2)
    assert out_n.shape == (batch, seq, nf2)
    assert jnp.allclose(out_n, ref_n, atol=1e-4, rtol=1e-4), "ragged-nf mismatch"

    print("KERNEL_OK")
</pallas_src>

<mosaic_0001>
module attributes {stable_mosaic.version = 11 : i64} {
  func.func @_conv1d_kernel(%arg0: i32, %arg1: i32, %arg2: memref<16x128xf32, #tpu.memory_space<vmem>>, %arg3: memref<128x256xf32, #tpu.memory_space<vmem>>, %arg4: memref<1x256xf32, #tpu.memory_space<vmem>>, %arg5: memref<16x256xf32, #tpu.memory_space<vmem>>) attributes {dimension_semantics = [#tpu.dimension_semantics<parallel>, #tpu.dimension_semantics<parallel>], iteration_bounds = array<i64: 1, 1>, scalar_prefetch = 0 : i64, scratch_operands = 0 : i64, tpu.core_type = #tpu.core_type<tc>, window_params = [{transform_indices = @transform_0, window_bounds = array<i64: 16, 128>}, {transform_indices = @transform_1, window_bounds = array<i64: 128, 256>}, {transform_indices = @transform_2, window_bounds = array<i64: 1, 256>}, {transform_indices = @transform_3, window_bounds = array<i64: 16, 256>}]} {
    %c0 = arith.constant 0 : index
    %c0_0 = arith.constant 0 : index
    %0 = vector.load %arg2[%c0, %c0_0] : memref<16x128xf32, #tpu.memory_space<vmem>>, vector<16x128xf32>
    %c0_1 = arith.constant 0 : index
    %c0_2 = arith.constant 0 : index
    %1 = vector.load %arg3[%c0_1, %c0_2] : memref<128x256xf32, #tpu.memory_space<vmem>>, vector<128x256xf32>
    %cst = arith.constant dense<0.000000e+00> : vector<16x256xf32>
    %2 = tpu.matmul %0, %1, %cst {dimension_numbers = #tpu.dot_dimension_numbers<[1], [0], [0], [1], [0, 0, 1, 1], [], []>} : vector<16x128xf32>, vector<128x256xf32>, vector<16x256xf32> -> vector<16x256xf32>
    %c0_3 = arith.constant 0 : index
    %c0_4 = arith.constant 0 : index
    %3 = vector.load %arg4[%c0_3, %c0_4] : memref<1x256xf32, #tpu.memory_space<vmem>>, vector<1x256xf32>
    %4 = vector.broadcast %3 : vector<1x256xf32> to vector<16x256xf32>
    %5 = arith.addf %2, %4 : vector<16x256xf32>
    %c0_5 = arith.constant 0 : index
    %c0_6 = arith.constant 0 : index
    %6 = vector.load %arg5[%c0_5, %c0_6] : memref<16x256xf32, #tpu.memory_space<vmem>>, vector<16x256xf32>
    tpu.vector_store %arg5[%c0_5, %c0_6], %5 {strides = array<i32>} : memref<16x256xf32, #tpu.memory_space<vmem>>, vector<16x256xf32>,
    return
  }
  func.func @transform_0(%arg0: i32, %arg1: i32) -> (i32, i32) {
    %c0_i32 = arith.constant 0 : i32
    %c0_i32_0 = arith.constant 0 : i32
    return %arg0, %c0_i32 : i32, i32
  }
  func.func @transform_1(%arg0: i32, %arg1: i32) -> (i32, i32) {
    %c0_i32 = arith.constant 0 : i32
    %c0_i32_0 = arith.constant 0 : i32
    return %c0_i32, %arg1 : i32, i32
  }
  func.func @transform_2(%arg0: i32, %arg1: i32) -> (i32, i32) {
    %c0_i32 = arith.constant 0 : i32
    %c0_i32_0 = arith.constant 0 : i32
    return %c0_i32, %arg1 : i32, i32
  }
  func.func @transform_3(%arg0: i32, %arg1: i32) -> (i32, i32) {
    %c0_i32 = arith.constant 0 : i32
    return %arg0, %arg1 : i32, i32
  }
}

</mosaic_0001>

<bundles_post_ra>
// kernel: conv1d_pallas.1
= control target key start
LH: loop header
LB: loop body
LE: loop exit
PB: predicated region body
PF: predicated region fallthrough
CT: control target
= control target key end

     0   :  { %8 = vsyncpa [#allocation3], 0  ;;  %s340_s0 = inlined_call_operand.hbm [shape: f32[16,128], index: 0, kind: input, shape index: {}]   ;;  %s341_s1 = inlined_call_operand.hbm [shape: f32[128,256], index: 1, kind: input, shape index: {}]   ;;  %s342_s2 = inlined_call_operand.vmem [shape: f32[1,256], index: 2, kind: input, shape index: {}]   ;;  %s343_s3 = inlined_call_operand.hbm [shape: f32[16,256], index: 3, kind: output, shape index: {}]  }
   0x1   :  { %9 = vsyncpa [#allocation6], 0 }
   0x2   :  { %10 = vsyncpa [#allocation4], 0  ;;  %s294_s12 = smov [#allocation2]  }
   0x3   :  { %s16_s13 = sshll.u32 %s294_s12, 4  ;;  %s17_s13 = int_to_ptr.vmem [resolvable:$true] %s16_s13 }
   0x4   :  { %s236_s14 = scalar_lea.vmem %s17_s13, 256  ;;  %p241_p1 = scmp.lt.s32.totalorder %s17_s13, %s17_s13 }
   0x5   :  { %p237_p0 = scmp.ne.s32.totalorder %s17_s13, %s236_s14  ;;  %p242_p2 = scmp.lt.s32.totalorder %s236_s14, %s236_s14 }
   0x7   :  { %p243_p3 = por %p242_p2, %p241_p1 }
   0x9   :  { %p244_p4 = pnand %p243_p3, %p237_p0 }
   0xb   :  { %247 = shalt.err (!%p244_p4)
}
   0xc   :  { %s295_s15 = smov 128   ;;  %s296_s16 = smov 8  }
   0xd   :  { %22 = dma.hbm_to_vmem [thread:$0]  %s340_s0, 256, %s17_s13, [#allocation3], %s295_s15, %s295_s15, %s296_s16  }
   0xe   :  { %s297_s19 = smov [#allocation5]  }
   0xf   :  { %s28_s20 = sshll.u32 %s297_s19, 4  ;;  %s29_s20 = int_to_ptr.vmem [resolvable:$true] %s28_s20 }
  0x10   :  { %s256_s21 = scalar_lea.vmem %s29_s20, 4096  ;;  %p261_p6 = scmp.lt.s32.totalorder %s29_s20, %s29_s20 }
  0x11   :  { %p257_p5 = scmp.ne.s32.totalorder %s29_s20, %s256_s21  ;;  %p262_p7 = scmp.lt.s32.totalorder %s256_s21, %s256_s21 }
  0x13   :  { %p263_p8 = por %p262_p7, %p261_p6 }
  0x15   :  { %p264_p9 = pnand %p263_p8, %p257_p5 }
  0x17   :  { %267 = shalt.err (!%p264_p9)
}
  0x18   :  { %s298_s22 = smov 256   ;;  %s299_s23 = smov 16  }
  0x19   :  { %34 = dma.hbm_to_vmem [thread:$0]  %s341_s1, 4096, %s29_s20, [#allocation6], %s298_s22, %s298_s22, %s299_s23  }
  0x1a   :  { %288 = dma.done.wait [#allocation3], 256  }
  0x1b   :  { %289 = vsyncadd [#allocation3], 4294967040 }
  0x1c   :  { %290 = dma.done.wait [#allocation6], 4096  }
  0x1d   :  { %291 = vsyncadd [#allocation6], 4294963200  ;;  %v300_v0 = vmov 0.0   ;;  %v76_v1 = vld [vmem:[#allocation5 + $0xf8] sm:$0xff]  ;;  %v75_v2 = vld [vmem:[#allocation5 + $0xf0] sm:$0xff]  ;;  %v79_v35 = vlaneseq  ;;  %s301_s26 = smov [#allocation7]  }
  0x1e   :  { %153 = vmatprep.mubr.f32.mxu0 %v300_v0  ;;  %159 = vmatprep.mubr.f32.mxu1 %v300_v0  ;;  %v74_v3 = vld [vmem:[#allocation5 + $0xe8] sm:$0xff]  ;;  %v73_v4 = vld [vmem:[#allocation5 + $0xe0] sm:$0xff]  ;;  %v72_v5 = vld [vmem:[#allocation5 + $0xd8] sm:$0xff]  ;;  %s175_s27 = sshll.u32 %s301_s26, 4  ;;  %s176_s27 = int_to_ptr.vmem [resolvable:$true] %s175_s27 }
  0x1f   :  { %89 = vmatprep.subr.mxu0 %v76_v1  ;;  %188 = vmatprep.subr.mxu1 %v76_v1  ;;  %v71_v6 = vld [vmem:[#allocation5 + $0xd0] sm:$0xff]  ;;  %v70_v7 = vld [vmem:[#allocation5 + $0xc8] sm:$0xff]  ;;  %v69_v8 = vld [vmem:[#allocation5 + $0xc0] sm:$0xff]  ;;  %v80_v36 = vshrl.u32 %v79_v35, 7  ;;  %s268_s28 = scalar_lea.vmem %s176_s27, 512  ;;  %p273_p11 = scmp.lt.s32.totalorder %s176_s27, %s176_s27 }
  0x20   :  { %90 = vmatpush1.msra.mxu0 %v75_v2  ;;  %204 = vmatpush1.msra.mxu1 %v75_v2  ;;  %v68_v9 = vld [vmem:[#allocation5 + $0xb8] sm:$0xff]  ;;  %v67_v10 = vld [vmem:[#allocation5 + $0xb0] sm:$0xff]  ;;  %v66_v11 = vld [vmem:[#allocation5 + $0xa8] sm:$0xff]  ;;  %p269_p10 = scmp.ne.s32.totalorder %s176_s27, %s268_s28  ;;  %p274_p12 = scmp.lt.s32.totalorder %s268_s28, %s268_s28 }
  0x21   :  { %91 = vmatprep.subr.mxu0 %v74_v3  ;;  %189 = vmatprep.subr.mxu1 %v74_v3  ;;  %v65_v12 = vld [vmem:[#allocation5 + $0xa0] sm:$0xff]  ;;  %v64_v13 = vld [vmem:[#allocation5 + $0x98] sm:$0xff]  ;;  %v63_v14 = vld [vmem:[#allocation5 + $0x90] sm:$0xff]  ;;  %v81_v37 = vsub.s32 0, %v80_v36  ;;  %v85_v39 = vsub.s32 1, %v80_v36 }
  0x22   :  { %92 = vmatpush1.msra.mxu0 %v73_v4  ;;  %205 = vmatpush1.msra.mxu1 %v73_v4  ;;  %v62_v15 = vld [vmem:[#allocation5 + $0x88] sm:$0xff]  ;;  %v61_v16 = vld [vmem:[#allocation5 + $0x80] sm:$0xff]  ;;  %v60_v17 = vld [vmem:[#allocation5 + $0x78] sm:$0xff]  ;;  %p275_p13 = por %p274_p12, %p273_p11 }
  0x23   :  { %93 = vmatprep.subr.mxu0 %v72_v5  ;;  %190 = vmatprep.subr.mxu1 %v72_v5  ;;  %v59_v18 = vld [vmem:[#allocation5 + $0x70] sm:$0xff]  ;;  %v58_v19 = vld [vmem:[#allocation5 + $0x68] sm:$0xff]  ;;  %v57_v20 = vld [vmem:[#allocation5 + $0x60] sm:$0xff] }
  0x24   :  { %94 = vmatpush1.msra.mxu0 %v71_v6  ;;  %206 = vmatpush1.msra.mxu1 %v71_v6  ;;  %v56_v21 = vld [vmem:[#allocation5 + $0x58] sm:$0xff]  ;;  %v55_v22 = vld [vmem:[#allocation5 + $0x50] sm:$0xff]  ;;  %v54_v23 = vld [vmem:[#allocation5 + $0x48] sm:$0xff]  ;;  %p276_p0 = pnand %p275_p13, %p269_p10 }
  0x25   :  { %95 = vmatprep.subr.mxu0 %v70_v7  ;;  %191 = vmatprep.subr.mxu1 %v70_v7  ;;  %v53_v24 = vld [vmem:[#allocation5 + $0x40] sm:$0xff]  ;;  %v52_v25 = vld [vmem:[#allocation5 + $0x38] sm:$0xff]  ;;  %v51_v26 = vld [vmem:[#allocation5 + $0x30] sm:$0xff] }
  0x26   :  { %96 = vmatpush1.msra.mxu0 %v69_v8  ;;  %207 = vmatpush1.msra.mxu1 %v69_v8  ;;  %v50_v27 = vld [vmem:[#allocation5 + $0x28] sm:$0xff]  ;;  %v49_v28 = vld [vmem:[#allocation5 + $0x20] sm:$0xff]  ;;  %v48_v29 = vld [vmem:[#allocation5 + $0x18] sm:$0xff] }
  0x27   :  { %97 = vmatprep.subr.mxu0 %v68_v9  ;;  %192 = vmatprep.subr.mxu1 %v68_v9  ;;  %v47_v30 = vld [vmem:[#allocation5 + $0x10] sm:$0xff]  ;;  %v46_v31 = vld [vmem:[#allocation5 + $0x8] sm:$0xff]  ;;  %v45_v32 = vld [vmem:[#allocation5] sm:$0xff] }
  0x28   :  { %98 = vmatpush1.msra.mxu0 %v67_v10  ;;  %208 = vmatpush1.msra.mxu1 %v67_v10  ;;  %v43_v33 = vld [vmem:[#allocation2] sm:$0xff]  ;;  %v44_v34 = vld [vmem:[#allocation2 + $0x8] sm:$0xff] }
  0x29   :  { %99 = vmatprep.subr.mxu0 %v66_v11  ;;  %193 = vmatprep.subr.mxu1 %v66_v11  ;;  %v77_v38 = vld [vmem:[%s342_s2] sm:$0x3] }
  0x2a   :  { %100 = vmatpush1.msra.mxu0 %v65_v12  ;;  %209 = vmatpush1.msra.mxu1 %v65_v12  ;;  %v82_v40 = vrot.slane %v77_v38, %v81_v37  ;;  %v86_v41 = vrot.slane %v77_v38, %v85_v39 }
  0x2b   :  { %101 = vmatprep.subr.mxu0 %v64_v13  ;;  %194 = vmatprep.subr.mxu1 %v64_v13 }
  0x2c   :  { %102 = vmatpush1.msra.mxu0 %v63_v14  ;;  %210 = vmatpush1.msra.mxu1 %v63_v14 }
  0x2d   :  { %103 = vmatprep.subr.mxu0 %v62_v15  ;;  %195 = vmatprep.subr.mxu1 %v62_v15 }
  0x2e   :  { %104 = vmatpush1.msra.mxu0 %v61_v16  ;;  %211 = vmatpush1.msra.mxu1 %v61_v16 }
  0x2f   :  { %105 = vmatprep.subr.mxu0 %v60_v17  ;;  %196 = vmatprep.subr.mxu1 %v60_v17 }
  0x30   :  { %106 = vmatpush1.msra.mxu0 %v59_v18  ;;  %212 = vmatpush1.msra.mxu1 %v59_v18 }
  0x31   :  { %107 = vmatprep.subr.mxu0 %v58_v19  ;;  %197 = vmatprep.subr.mxu1 %v58_v19 }
  0x32   :  { %108 = vmatpush1.msra.mxu0 %v57_v20  ;;  %213 = vmatpush1.msra.mxu1 %v57_v20 }
  0x33   :  { %109 = vmatprep.subr.mxu0 %v56_v21  ;;  %198 = vmatprep.subr.mxu1 %v56_v21 }
  0x34   :  { %110 = vmatpush1.msra.mxu0 %v55_v22  ;;  %214 = vmatpush1.msra.mxu1 %v55_v22 }
  0x35   :  { %111 = vmatprep.subr.mxu0 %v54_v23  ;;  %199 = vmatprep.subr.mxu1 %v54_v23 }
  0x36   :  { %112 = vmatpush1.msra.mxu0 %v53_v24  ;;  %215 = vmatpush1.msra.mxu1 %v53_v24 }
  0x37   :  { %113 = vmatprep.subr.mxu0 %v52_v25  ;;  %200 = vmatprep.subr.mxu1 %v52_v25 }
  0x38   :  { %114 = vmatpush1.msra.mxu0 %v51_v26  ;;  %216 = vmatpush1.msra.mxu1 %v51_v26 }
  0x39   :  { %115 = vmatprep.subr.mxu0 %v50_v27  ;;  %201 = vmatprep.subr.mxu1 %v50_v27 }
  0x3a   :  { %116 = vmatpush1.msra.mxu0 %v49_v28  ;;  %217 = vmatpush1.msra.mxu1 %v49_v28 }
  0x3b   :  { %117 = vmatprep.subr.mxu0 %v48_v29  ;;  %202 = vmatprep.subr.mxu1 %v48_v29 }
  0x3c   :  { %118 = vmatpush1.msra.mxu0 %v47_v30  ;;  %218 = vmatpush1.msra.mxu1 %v47_v30 }
  0x3d   :  { %119 = vmatprep.subr.mxu0 %v46_v31  ;;  %203 = vmatprep.subr.mxu1 %v46_v31 }
  0x3e   :  { %120 = vmatpush1.msra.mxu0 %v45_v32  ;;  %219 = vmatpush1.msra.mxu1 %v45_v32 }
  0x3f   :  { %154 = vmatmul.mubr.f32.vlgmr.msra.gmra.mxu0 %v43_v33  ;;  %160 = vmatmul.mubr.f32.vlgmr.msra.gmra.mxu1 %v44_v34 }
  0xff   :  { %v155_v42 = vpop.f32.mrf.mxu0  ;;  %v161_v43 = vpop.f32.mrf.mxu1 }
 0x100   :  { %v156_v44 = vadd.f32 %v155_v42, %v82_v40  ;;  %v162_v45 = vadd.f32 %v161_v43, %v82_v40 }
 0x101   :  { %v157_v46 = vpop.f32.mrf.mxu0  ;;  %v163_v47 = vpop.f32.mrf.mxu1 }
 0x102   :  { %166 = vst [vmem:[#allocation7] sm:$0xff] %v156_v44  ;;  %168 = vst [vmem:[#allocation7 + $0x10] sm:$0xff] %v162_v45  ;;  %v158_v48 = vadd.f32 %v157_v46, %v86_v41  ;;  %v164_v49 = vadd.f32 %v163_v47, %v86_v41 }
 0x104   :  { %167 = vst [vmem:[#allocation7 + $0x8] sm:$0xff] %v158_v48  ;;  %169 = vst [vmem:[#allocation7 + $0x18] sm:$0xff] %v164_v49 }
 0x105   :  { %279 = shalt.err (!%p276_p0)
}
 0x106   :  { %181 = dma.vmem_to_hbm [thread:$0]  %s176_s27, 512, %s343_s3, [#allocation4], %s298_s22, %s298_s22, %s299_s23  }
 0x107   :  { %292 = dma.done.wait [#allocation4], 512  }
 0x108   :  { %293 = vsyncadd [#allocation4], 4294966784 }
 0x109   :  { %185 = vsyncpa [#allocation3], 1 }
 0x10a   :  { %186 = vsyncpa [#allocation6], 1 }
 0x10b   :  { %187 = vsyncpa [#allocation4], 1 }

</bundles_post_ra>
